<compile_context>
chip_gen: v7x
topology: tpu7x:2x2x1
jax: 0.10.0
libtpu: 0.0.40
codegen_flags: <defaults>
</compile_context>

<pallas_src>
import functools

import jax
import jax.numpy as jnp
import numpy as np
from jax.experimental import pallas as pl
from jax.experimental.pallas import tpu as pltpu

_LANE = 128
_SUBLANE_F32 = 8

# Large-tensor (dedicated) path: ~4 MiB per DMA buffer regardless of dtype.
_DEFAULT_TILE_ROWS = 8192          # f32: 8192*128*4B = 4 MiB; bf16 uses 2x the rows.
# Batched medium-tensor path: 512 rows * 128 lanes * 4B = 256 KiB per block.
_DEFAULT_BATCH_TILE_ROWS = 512
# Routing thresholds (element counts).
_SMALL_PARAM_ELEMS = 1024          # below: plain XLA
_LARGE_PARAM_ELEMS = 1 << 22       # >= 4M elements: dedicated zero-copy kernel


def _round_up(x, m):
    return ((x + m - 1) // m) * m


# --------------------------------------------------------------------------- #
# Dedicated kernel for large tensors (native dtype reads, no HBM copy)         #
# --------------------------------------------------------------------------- #
def _abs_sum_kernel(x_ref, out_ref, acc_ref, *, tile_rows, total_rows,
                    blocks_per_split, mask_rows):
    """Accumulate sum(|x|) of one (tile_rows, 128) block into a lane-wise acc."""
    i = pl.program_id(1)                                  # reduction axis

    @pl.when(i == 0)
    def _():
        acc_ref[...] = jnp.zeros_like(acc_ref)

    xa = jnp.abs(x_ref[...].astype(jnp.float32))          # (tile_rows, 128)
    if mask_rows:
        # Only emitted when a block is partial / an overflow block: padding bytes
        # read by the DMA are undefined, so zero rows past the true row count.
        s = pl.program_id(0)
        base = (s * blocks_per_split + i) * tile_rows
        rid = jax.lax.broadcasted_iota(jnp.int32, xa.shape, 0) + base
        xa = jnp.where(rid < total_rows, xa, 0.0)

    # Lane-parallel partial sums (VPU adds down the sublane axis); broadcast-add
    # into the (8,128) accumulator -> no per-step cross-lane reduce, no scalar dep.
    acc_ref[...] += jnp.sum(xa, axis=0, keepdims=True)

    @pl.when(i == pl.num_programs(1) - 1)
    def _():
        out_ref[0] = acc_ref[...]                         # single writeback/split


def _abs_sum_pallas(flat, tile_rows):
    """sum(|flat|) for a large 1-D tensor, read at native dtype width."""
    numel = int(flat.shape[0])
    itemsize = jnp.dtype(flat.dtype).itemsize
    packing = max(1, 4 // itemsize)
    sublane = _SUBLANE_F32 * packing

    # dtype-scaled tile: keep the per-step DMA roughly constant in *bytes*.
    tile_rows = _round_up(max(tile_rows * packing, sublane), sublane)

    rows = -(-numel // _LANE)
    if rows * _LANE != numel:
        # Ragged by <128 elements (rare for real params). Only case costing a copy.
        flat = jnp.pad(flat, (0, rows * _LANE - numel))
    x2d = flat.reshape(rows, _LANE)          # free bitcast view of the ravel

    tile = rows if rows <= tile_rows else tile_rows
    blocks_total = -(-rows // tile)
    # 2-way split over the "parallel" axis -> both v7x TensorCores pull HBM;
    # single-TC chips just run the halves sequentially.
    splits = 2 if blocks_total >= 2 else 1
    bps = -(-blocks_total // splits)
    mask_rows = (splits * bps * tile) != rows

    kernel = functools.partial(
        _abs_sum_kernel, tile_rows=tile, total_rows=rows,
        blocks_per_split=bps, mask_rows=mask_rows)

    def x_map(s, i):
        blk = s * bps + i
        if splits * bps != blocks_total:          # odd block count: clamp overflow
            blk = jnp.minimum(blk, blocks_total - 1)  # re-reads last block, fully masked
        return (blk, 0)

    out = pl.pallas_call(
        kernel,
        out_shape=jax.ShapeDtypeStruct((splits, _SUBLANE_F32, _LANE), jnp.float32),
        grid=(splits, bps),
        in_specs=[pl.BlockSpec((tile, _LANE), x_map)],
        out_specs=pl.BlockSpec((1, _SUBLANE_F32, _LANE), lambda s, i: (s, 0, 0)),
        scratch_shapes=[pltpu.VMEM((_SUBLANE_F32, _LANE), jnp.float32)],
        compiler_params=pltpu.CompilerParams(
            dimension_semantics=("parallel", "arbitrary"),
            vmem_limit_bytes=32 * 1024 * 1024,   # headroom even on v7x (64 MiB VMEM)
        ),
    )(x2d)
    # Each split's 8 sublane rows are identical copies; final cross-lane reduce here.
    return jnp.sum(out[:, 0, :])


# --------------------------------------------------------------------------- #
# Fused kernel for many medium-sized params (one launch, scalar-prefetch scale) #
# --------------------------------------------------------------------------- #
def _batched_abs_mean_kernel(scale_ref, x_ref, out_ref, acc_ref):
    """scale_ref[b] = 1/numel of the param owning block b, so acc collects
    sum_i mean(|p_i|) directly."""
    b = pl.program_id(0)

    @pl.when(b == 0)
    def _():
        acc_ref[...] = jnp.zeros_like(acc_ref)

    xa = jnp.abs(x_ref[...])                               # already f32
    acc_ref[...] += scale_ref[b] * jnp.sum(xa, axis=0, keepdims=True)

    @pl.when(b == pl.num_programs(0) - 1)
    def _():
        out_ref[0] = acc_ref[...]


def _batched_abs_mean_pallas(flats, tile_rows):
    """One pallas_call over many concatenated params; returns sum_i mean(|p_i|)."""
    tile_rows = _round_up(max(tile_rows, _SUBLANE_F32), _SUBLANE_F32)
    blk_elems = tile_rows * _LANE

    segs, scales = [], []
    for flat in flats:
        numel = int(flat.shape[0])
        padded = _round_up(numel, blk_elems)       # align each param to a block
        seg = flat.astype(jnp.float32)
        if padded != numel:
            seg = jnp.pad(seg, (0, padded - numel))  # zeros add nothing to sum(|x|)
        segs.append(seg.reshape(-1, _LANE))
        scales.append(np.full(padded // blk_elems, 1.0 / numel, np.float32))

    x = jnp.concatenate(segs, axis=0)
    scale = jnp.asarray(np.concatenate(scales))
    num_blocks = x.shape[0] // tile_rows

    out = pl.pallas_call(
        _batched_abs_mean_kernel,
        out_shape=jax.ShapeDtypeStruct((1, _SUBLANE_F32, _LANE), jnp.float32),
        grid_spec=pltpu.PrefetchScalarGridSpec(
            num_scalar_prefetch=1,
            grid=(num_blocks,),
            in_specs=[pl.BlockSpec((tile_rows, _LANE), lambda b, scale_ref: (b, 0))],
            out_specs=pl.BlockSpec((1, _SUBLANE_F32, _LANE),
                                   lambda b, scale_ref: (0, 0, 0)),
            scratch_shapes=[pltpu.VMEM((_SUBLANE_F32, _LANE), jnp.float32)],
        ),
        compiler_params=pltpu.CompilerParams(
            dimension_semantics=("arbitrary",),
            vmem_limit_bytes=32 * 1024 * 1024,
        ),
    )(scale, x)
    return jnp.sum(out[0, 0, :])


# --------------------------------------------------------------------------- #
# Public API: Pallas equivalent of L1regularization.forward(model)             #
# --------------------------------------------------------------------------- #
def l1_regularization(params, weight_decay=0.1, *,
                      tile_rows=_DEFAULT_TILE_ROWS,
                      batch_tile_rows=_DEFAULT_BATCH_TILE_ROWS,
                      small_param_threshold=_SMALL_PARAM_ELEMS,
                      large_param_threshold=_LARGE_PARAM_ELEMS):
    """sum over parameter leaves of mean(|p|) * weight_decay."""
    total = jnp.float32(0.0)
    batched = []
    for p in jax.tree_util.tree_leaves(params):
        flat = jnp.ravel(p)
        numel = int(flat.shape[0])
        if numel == 0:
            continue
        if numel < small_param_threshold:
            # tiny tensors: XLA fuses these; a kernel launch would cost more
            total = total + jnp.sum(jnp.abs(flat.astype(jnp.float32))) * (1.0 / numel)
        elif numel < large_param_threshold:
            batched.append(flat)               # fused into one pallas_call below
        else:
            total = total + _abs_sum_pallas(flat, tile_rows) * (1.0 / numel)
    if batched:
        total = total + _batched_abs_mean_pallas(batched, batch_tile_rows)
    return total * weight_decay


def _l1_regularization_ref(params, weight_decay=0.1):
    total = jnp.float32(0.0)
    for p in jax.tree_util.tree_leaves(params):
        total = total + jnp.mean(jnp.abs(p.astype(jnp.float32))) * weight_decay
    return total


if __name__ == "__main__":
    key = jax.random.PRNGKey(0)
    ks = jax.random.split(key, 7)

    # Small "model" parameter pytree covering every code path:
    #   tiny -> XLA, medium -> batched fused kernel, large -> dedicated split kernel
    params = {
        "scalar_gain": jnp.float32(0.7),                                   # XLA
        "bias_small": jax.random.normal(ks[0], (17,), jnp.float32),        # XLA
        "fc1_w": jax.random.normal(ks[1], (32, 64), jnp.float32),          # batched
        "odd_w": jax.random.normal(ks[2], (300, 7), jnp.float32),          # batched (ragged)
        "fc2_w": jax.random.normal(ks[3], (64, 128), jnp.bfloat16),        # batched (bf16)
        "conv_w": jax.random.normal(ks[4], (1000, 33), jnp.float32),       # dedicated, masked tail
        "emb_w": jax.random.normal(ks[5], (1024, 256), jnp.float32),       # dedicated, 2-way split
        "proj_w": jax.random.normal(ks[6], (512, 384), jnp.bfloat16),      # dedicated, bf16
    }

    # Lowered thresholds / tile sizes so the small demo exercises the multi-block
    # accumulator, the 2-way split, and the masked partial-block paths.
    loss = l1_regularization(params, weight_decay=0.1,
                             tile_rows=64, batch_tile_rows=16,
                             small_param_threshold=1024,
                             large_param_threshold=30000)
    loss = jax.block_until_ready(loss)

    ref = _l1_regularization_ref(params, weight_decay=0.1)
    assert jnp.allclose(loss, ref, rtol=1e-4, atol=1e-6), (loss, ref)

    print("KERNEL_OK")
</pallas_src>

<mosaic_0001>
module attributes {stable_mosaic.version = 11 : i64} {
  func.func @_abs_sum_kernel(%arg0: i32, %arg1: i32, %arg2: memref<64x128xf32, #tpu.memory_space<vmem>>, %arg3: memref<1x8x128xf32, #tpu.memory_space<vmem>>, %arg4: memref<8x128xf32, #tpu.memory_space<vmem>>) attributes {dimension_semantics = [#tpu.dimension_semantics<parallel>, #tpu.dimension_semantics<arbitrary>], iteration_bounds = array<i64: 2, 3>, scalar_prefetch = 0 : i64, scratch_operands = 1 : i64, tpu.core_type = #tpu.core_type<tc>, window_params = [{transform_indices = @transform_0, window_bounds = array<i64: 64, 128>}, {transform_indices = @transform_1, window_bounds = array<i64: 1, 8, 128>}]} {
    %c0_i32 = arith.constant 0 : i32
    %0 = arith.cmpi eq, %arg1, %c0_i32 : i32
    %1 = arith.extui %0 : i1 to i32
    %c0_i32_0 = arith.constant 0 : i32
    %2 = arith.cmpi ne, %1, %c0_i32_0 : i32
    scf.if %2 {
      %cst_8 = arith.constant 0.000000e+00 : f32
      %24 = vector.broadcast %cst_8 : f32 to vector<8x128xf32>
      %c0_9 = arith.constant 0 : index
      %c0_10 = arith.constant 0 : index
      %25 = vector.load %arg4[%c0_9, %c0_10] : memref<8x128xf32, #tpu.memory_space<vmem>>, vector<8x128xf32>
      tpu.vector_store %arg4[%c0_9, %c0_10], %24 {strides = array<i32>} : memref<8x128xf32, #tpu.memory_space<vmem>>, vector<8x128xf32>,
    } else {
    }
    %c0 = arith.constant 0 : index
    %c0_1 = arith.constant 0 : index
    %3 = vector.load %arg2[%c0, %c0_1] : memref<64x128xf32, #tpu.memory_space<vmem>>, vector<64x128xf32>
    %4 = math.absf %3 : vector<64x128xf32>
    %c3_i32 = arith.constant 3 : i32
    %5 = arith.muli %arg0, %c3_i32 : i32
    %6 = arith.addi %5, %arg1 : i32
    %c64_i32 = arith.constant 64 : i32
    %7 = arith.muli %6, %c64_i32 : i32
    %8 = tpu.iota {dimensions = array<i32: 0>} : vector<64x128xi32>
    %9 = vector.broadcast %7 : i32 to vector<64x128xi32>
    %10 = arith.addi %8, %9 : vector<64x128xi32>
    %c258_i32 = arith.constant 258 : i32
    %11 = vector.broadcast %c258_i32 : i32 to vector<64x128xi32>
    %12 = arith.cmpi slt, %10, %11 : vector<64x128xi32>
    %cst = arith.constant 0.000000e+00 : f32
    %13 = vector.broadcast %cst : f32 to vector<64x128xf32>
    %14 = arith.select %12, %4, %13 : vector<64x128xi1>, vector<64x128xf32>
    %c0_2 = arith.constant 0 : index
    %c0_3 = arith.constant 0 : index
    %15 = vector.load %arg4[%c0_2, %c0_3] : memref<8x128xf32, #tpu.memory_space<vmem>>, vector<8x128xf32>
    %cst_4 = arith.constant dense<0.000000e+00> : vector<128xf32>
    %16 = vector.multi_reduction <add>, %14, %cst_4 [0] : vector<64x128xf32> to vector<128xf32>
    %17 = vector.shape_cast %16 : vector<128xf32> to vector<1x128xf32>
    %18 = vector.broadcast %17 : vector<1x128xf32> to vector<8x128xf32>
    %19 = arith.addf %15, %18 : vector<8x128xf32>
    %c0_5 = arith.constant 0 : index
    %c0_6 = arith.constant 0 : index
    %20 = vector.load %arg4[%c0_5, %c0_6] : memref<8x128xf32, #tpu.memory_space<vmem>>, vector<8x128xf32>
    tpu.vector_store %arg4[%c0_5, %c0_6], %19 {strides = array<i32>} : memref<8x128xf32, #tpu.memory_space<vmem>>, vector<8x128xf32>,
    %c2_i32 = arith.constant 2 : i32
    %21 = arith.cmpi eq, %arg1, %c2_i32 : i32
    %22 = arith.extui %21 : i1 to i32
    %c0_i32_7 = arith.constant 0 : i32
    %23 = arith.cmpi ne, %22, %c0_i32_7 : i32
    scf.if %23 {
      %c0_8 = arith.constant 0 : index
      %c0_9 = arith.constant 0 : index
      %24 = vector.load %arg4[%c0_8, %c0_9] : memref<8x128xf32, #tpu.memory_space<vmem>>, vector<8x128xf32>
      %c0_10 = arith.constant 0 : index
      %c0_11 = arith.constant 0 : index
      %c0_12 = arith.constant 0 : index
      %25 = vector.load %arg3[%c0_10, %c0_11, %c0_12] : memref<1x8x128xf32, #tpu.memory_space<vmem>>, vector<1x8x128xf32>
      %26 = vector.shape_cast %25 : vector<1x8x128xf32> to vector<8x128xf32>
      %27 = vector.shape_cast %24 : vector<8x128xf32> to vector<1x8x128xf32>
      tpu.vector_store %arg3[%c0_10, %c0_11, %c0_12], %27 {strides = array<i32>} : memref<1x8x128xf32, #tpu.memory_space<vmem>>, vector<1x8x128xf32>,
    } else {
    }
    return
  }
  func.func @transform_0(%arg0: i32, %arg1: i32) -> (i32, i32) {
    %c3_i32 = arith.constant 3 : i32
    %0 = arith.muli %arg0, %c3_i32 : i32
    %1 = arith.addi %0, %arg1 : i32
    %c4_i32 = arith.constant 4 : i32
    %2 = arith.minsi %1, %c4_i32 : i32
    %c0_i32 = arith.constant 0 : i32
    %c0_i32_0 = arith.constant 0 : i32
    return %2, %c0_i32 : i32, i32
  }
  func.func @transform_1(%arg0: i32, %arg1: i32) -> (i32, i32, i32) {
    %c0_i32 = arith.constant 0 : i32
    %c0_i32_0 = arith.constant 0 : i32
    %c0_i32_1 = arith.constant 0 : i32
    return %arg0, %c0_i32, %c0_i32_0 : i32, i32, i32
  }
}

</mosaic_0001>

<bundles_post_ra>
// kernel: tpu_custom_call.1
= control target key start
LH: loop header
LB: loop body
LE: loop exit
PB: predicated region body
PF: predicated region fallthrough
CT: control target
= control target key end

     0   :  { %6 = vsyncpa [#allocation4], 0  ;;  %s885_s0 = inlined_call_operand.hbm [shape: f32[258,128], index: 0, kind: input, shape index: {}]   ;;  %s886_s1 = inlined_call_operand.hbm [shape: f32[2,8,128], index: 1, kind: output, shape index: {}]  }
   0x1   :  { %8 = vsyncpa [#allocation4 + $0x1], 0 }
   0x2   :  { %9 = vsyncpa [#allocation5], 0 }
   0x3   :  { %11 = vsyncpa [#allocation5 + $0x1], 0  ;;  %s637_s6 = smov 0   ;;  %s639_s7 = smov 0  }
   0x4   :  { %s641_s8 = smov 0   ;;  %s643_s9 = smov 0  }
   0x5   :  { %s645_s10 = smov 0   ;;  %s647_s11 = smov 0  }
   0x6   :  { %s649_s12 = smov 0   ;;  %s651_s13 = smov 0  }
   0x7   :  { %s653_s14 = smov 0   ;;  %s655_s15 = smov 0  }
   0x8   :  { %s657_s16 = smov 0  }
   0x9 LB: > { %s349_s17 = sadd.s32 4294967295, %s620_s16   ;;  %s350_s18 = sadd.s32 4294967294, %s620_s16   ;;  %s620_s16 = sphi %s657_s16, %s17_s16   ;;  %s616_s15 = sphi %s655_s15, %s904_s15   ;;  %s612_s14 = sphi %s653_s14, %s903_s14   ;;  %s608_s13 = sphi %s651_s13, %s902_s13   ;;  %s604_s12 = sphi %s649_s12, %s901_s12   ;;  %s600_s11 = sphi %s647_s11, %s900_s11   ;;  %s596_s10 = sphi %s645_s10, %s899_s10   ;;  %s592_s9 = sphi %s643_s9, %s898_s9   ;;  %s588_s8 = sphi %s641_s8, %s897_s8   ;;  %s584_s7 = sphi %s639_s7, %s896_s7   ;;  %s580_s6 = sphi %s637_s6, %s895_s6  }
   0xa   : > { %s26_s19 = sadd.s32 1, %s612_s14  ;;  %s29_s20 = sadd.s32 1, %s616_s15 }
   0xb   : > { %p27_p0 = scmp.ge.s32.totalorder %s26_s19, 3  ;;  %s33_s21 = smul.u32 3, %s616_s15 }
   0xc   : > { %s44_s22 = sadd.s32 1, %s600_s11  ;;  %p51_p1 = scmp.ne.s32.totalorder %s600_s11, %s596_s10 }
   0xd   : > { %s906_s19 = smov (%p27_p0, %s26_s19), 0  ;;  %s908_s20 = smov (!%p27_p0, %s29_s20), %s616_s15 }
   0xe   : > { %s34_s23 = sadd.s32 %s612_s14, %s33_s21  ;;  %p52_p2 = scmp.eq.s32.totalorder %s620_s16, 0 }
   0xf   : > { %p31_p3 = scmp.ge.s32.totalorder %s908_s20, 2  ;;  %p35_p4 = scmp.lt.s32.totalorder %s34_s23, 4 }
  0x10   : > { %p705_p5 = por %p52_p2, %p51_p1  ;;  %p57_p6 = scmp.ne.s32.totalorder %s596_s10, %s592_s9 }
  0x11   : > { %s910_s20 = smov (%p31_p3, %s908_s20), 0  ;;  %s912_s23 = smov (!%p35_p4, %s34_s23), 4 }
  0x12   : > { %889 = sst [smem:[#allocation9_spill]] %s910_s20  ;;  %s37_s25 = smul.u32 3, %s910_s20 }
  0x13   : > { %p58_p7 = scmp.eq.s32.totalorder %s349_s17, 0  ;;  %s67_s26 = ssub.s32 %s616_s15, %s910_s20 }
  0x14   : > { %s70_s27 = sadd.s32 1, %s588_s8  ;;  %s38_s28 = sadd.s32 %s37_s25, %s906_s19 }
  0x15   : > { %p720_p8 = por %p58_p7, %p57_p6  ;;  %p39_p9 = scmp.lt.s32.totalorder %s38_s28, 4 }
  0x16   : > { %p68_p10 = scmp.eq.s32.totalorder %s67_s26, 0  ;;  %p80_p11 = scmp.ne.s32.totalorder %s588_s8, %s584_s7 }
  0x17   : > { %p81_p12 = scmp.eq.s32.totalorder %s349_s17, 5  ;;  %s914_s28 = smov (!%p39_p9, %s38_s28), 4 }
  0x18   : > { %s727_s30 = scalar_select %p68_p10, %s588_s8, %s70_s27  }
  0x19   : > { %s41_s2 = ssub.s32 %s912_s23, %s914_s28  ;;  %p730_p13 = por %p81_p12, %p80_p11 }
  0x1a   : > { %p42_p0 = scmp.eq.s32.totalorder %s41_s2, 0  ;;  %p86_p1 = scmp.ne.s32.totalorder %s584_s7, %s580_s6 }
  0x1b   : > { %p87_p2 = scmp.eq.s32.totalorder %s350_s18, 5  ;;  %p352_p4 = scmp.ge.s32.totalorder %s620_s16, 6 }
  0x1c   : > { %s741_s4 = scalar_select %p42_p0, %s600_s11, %s44_s22  }
  0x1d   : > { %p743_p3 = por %p87_p2, %p86_p1  ;;  %103 = sbr.rel (%p352_p4) target bundleno = 71 (0x47), region = 16 }
  0x1f   : > { %s892_s5 = scalar_select %p743_p3, 1, 0 }
  0x24   : > { %106 = sbr.rel (!%p705_p5) target bundleno = 71 (0x47), region = 20  ;;  %s107_s9 = sand.u32 (%p705_p5), 1, %s600_s11  }
  0x25   : > { %s354_s17 = sshll.u32 (%p705_p5), %s912_s23, 3  ;;  %s353_s21 = sshll.u32 (%p705_p5), %s107_s9, 6 }
  0x26   : > { %s117_s25 = ssub.s32 (%p705_p5), 33, %s354_s17  ;;  %s755_s26 = scalar_lea.sflag (%p705_p5), [#allocation4], %s107_s9 }
  0x27   : > { %p118_p6 = scmp.lt.s32.totalorder (%p705_p5), %s117_s25, 8  ;;  %s111_s27 = scalar_lea.vmem (%p705_p5), [#allocation3], %s353_s21 }
  0x2b   : > { %s916_s25 = smov (!%p118_p6, %s117_s25), 8 }
  0x2c   : > { %s752_s18 = sshll.u32 %s916_s25, 7 }
  0x2d   : > { %s122_s22 = ssub.s32 1024, %s752_s18 }
  0x2e   : > { %123 = vsyncadd %s755_s26, %s122_s22  ;;  %p356_p5 = scmp.ne.s32.totalorder %s752_s18, 0  ;;  %s370_s24 = sshll.u32 %s912_s23, 10 }
  0x2f   : > { %s763_s17 = scalar_lea.hbm %s885_s0, %s370_s24  ;;  %s128_s9 = sshll.u32 %s111_s27, 4  ;;  %s765_s9 = int_to_ptr.vmem [resolvable:$true] %s128_s9 }
  0x30   : > { %s470_s21 = scalar_lea.hbm %s763_s17, %s752_s18  ;;  %s474_s23 = scalar_lea.hbm %s885_s0, 4224 }
  0x31   : > { %p471_p7 = scmp.ne.s32.totalorder %s763_s17, %s470_s21  ;;  %p475_p11 = scmp.lt.u32.totalorder %s763_s17, %s885_s0 }
  0x32   : > { %p476_p12 = scmp.lt.u32.totalorder %s474_s23, %s470_s21  ;;  %p478_p1 = scmp.lt.u32.totalorder %s470_s21, %s763_s17 }
  0x33   : > { %p472_p9 = pnand %p471_p7, %p356_p5 }
  0x34   : > { %p477_p0 = por %p476_p12, %p475_p11 }
  0x35   : > { %p473_p10 = pneg %p472_p9 }
  0x36   : > { %p479_p2 = por %p478_p1, %p477_p0 }
  0x38   : > { %p480_p4 = pnand %p479_p2, %p473_p10 }
  0x3a   : > { %483 = shalt.err (!%p480_p4)
}
  0x3b   : > { %s484_s27 = scalar_lea.vmem %s765_s9, %s752_s18  ;;  %s622_s24 = smov [#allocation3]  }
  0x3c   : > { %p485_p6 = scmp.ne.s32.totalorder %s765_s9, %s484_s27  ;;  %s488_s2 = sshll.u32 %s622_s24, 4  ;;  %s489_s2 = int_to_ptr.vmem [resolvable:$false] %s488_s2 }
  0x3d   : > { %s490_s20 = scalar_lea.vmem %s489_s2, 2048  ;;  %p491_p3 = scmp.lt.s32.totalorder %s765_s9, %s489_s2 }
  0x3e   : > { %p486_p7 = pnand %p485_p6, %p356_p5  ;;  %p492_p11 = scmp.lt.s32.totalorder %s490_s20, %s484_s27 }
  0x40   : > { %p487_p9 = pneg %p486_p7  ;;  %p493_p12 = por %p492_p11, %p491_p3 }
  0x42   : > { %p494_p0 = pnand %p493_p12, %p487_p9 }
  0x44   : > { %497 = shalt.err (!%p494_p0)
}
  0x45   : > { %s623_s21 = smov 128   ;;  %s624_s25 = smov 8  }
  0x46   : > { %134 = dma.hbm_to_vmem [thread:$0]  (%p356_p5), %s763_s17, %s752_s18, %s765_s9, %s755_s26, %s623_s21, %s623_s21, %s624_s25  }
  0x47 PF: > { %p360_p10 = scmp.ge.s32.totalorder %s620_s16, 1  ;;  %p136_p1 = scmp.lt.s32.totalorder %s620_s16, 7 }
  0x49   : > { %p137_p2 = pnand %p360_p10, %p136_p1 }
  0x4a   : > { %s142_s22 = sand.u32 (!%p137_p2), 1, %s596_s10  }
  0x4b   : > { %140 = sbr.rel (%p137_p2) target bundleno = 163 (0xa3), region = 24  ;;  %s361_s23 = sshll.u32 (!%p137_p2), %s142_s22, 6 }
  0x4c   : > { %s143_s28 = scalar_lea.sflag (!%p137_p2), [#allocation4], %s142_s22  ;;  %s795_s27 = scalar_lea.vmem (!%p137_p2), [#allocation3], %s361_s23 }
  0x52   : > { %571 = dma.done.wait (%p720_p8), %s143_s28, 1024  }
  0x53   : > { %573 = vsyncadd (%p720_p8), %s143_s28, 4294966272  ;;  %s162_s18 = sand.u32 1, %s584_s7   ;;  %p363_p3 = scmp.ne.s32.totalorder %s604_s12, 0 }
  0x54   : > { %s804_s26 = sshll.u32 %s162_s18, 3  ;;  %v625_v0 = vmov (!%p363_p3), 0.0  }
  0x55   : > { %s164_s17 = scalar_lea.vmem [#allocation6], %s804_s26  ;;  %177 = sbr.rel (%p363_p3) target bundleno = 92 (0x5c), region = 32  ;;  %178 = vst [vmem:[#allocation2] sm:$0xff] (!%p363_p3), %v625_v0 }
  0x5c PF: > { %s195_s29 = smul.u32 3, %s608_s13  ;;  %v198_v1 = vlaneseq  ;;  %v179_v2 = vld [vmem:[%s795_s27] sm:$0xff]  ;;  %v180_v3 = vld [vmem:[%s795_s27 + $0x8] sm:$0xff]  ;;  %v181_v5 = vld [vmem:[%s795_s27 + $0x10] sm:$0xff]  ;;  %p365_p8 = scmp.ne.s32.totalorder %s604_s12, 2 }
  0x5d   : > { %v182_v11 = vld [vmem:[%s795_s27 + $0x18] sm:$0xff]  ;;  %v187_v12 = vand.u32 2147483647, %v179_v2  ;;  %v188_v13 = vand.u32 2147483647, %v180_v3  ;;  %v183_v20 = vld [vmem:[%s795_s27 + $0x20] sm:$0xff] }
  0x5e   : > { %s196_s9 = sadd.s32 %s604_s12, %s195_s29  ;;  %v199_v4 = vshrl.u32 %v198_v1, 7  ;;  %v189_v16 = vand.u32 2147483647, %v181_v5  ;;  %v190_v23 = vand.u32 2147483647, %v182_v11  ;;  %v184_v24 = vld [vmem:[%s795_s27 + $0x28] sm:$0xff] }
  0x5f   : > { %s364_s24 = sshll.u32 %s196_s9, 6  ;;  %v191_v28 = vand.u32 2147483647, %v183_v20  ;;  %v185_v31 = vld [vmem:[%s795_s27 + $0x30] sm:$0xff]  ;;  %v192_v34 = vand.u32 2147483647, %v184_v24 }
  0x60   : > { %v207_v6 = vstv %s364_s24  ;;  %v200_v7 = vadd.s32 8, %v199_v4  ;;  %v201_v8 = vadd.s32 16, %v199_v4  ;;  %v202_v9 = vadd.s32 24, %v199_v4  ;;  %v186_v36 = vld [vmem:[%s795_s27 + $0x38] sm:$0xff] }
  0x61   : > { %v203_v10 = vadd.s32 32, %v199_v4  ;;  %v204_v14 = vadd.s32 40, %v199_v4  ;;  %v208_v15 = vadd.s32 %v207_v6, %v199_v4  ;;  %v205_v21 = vadd.s32 48, %v199_v4  ;;  %v232_v55 = vld [vmem:[#allocation2] sm:$0xff] }
  0x62   : > { %v209_v17 = vadd.s32 %v207_v6, %v200_v7  ;;  %v210_v18 = vadd.s32 %v207_v6, %v201_v8  ;;  %v211_v19 = vadd.s32 %v207_v6, %v202_v9  ;;  %v206_v25 = vadd.s32 56, %v199_v4 }
  0x63   : > { %v212_v22 = vadd.s32 %v207_v6, %v203_v10  ;;  %vm216_vm0 = vcmp.lt.s32.totalorder %v208_v15, 258  ;;  %v213_v26 = vadd.s32 %v207_v6, %v204_v14  ;;  %v214_v32 = vadd.s32 %v207_v6, %v205_v21 }
  0x64   : > { %vm217_vm1 = vcmp.lt.s32.totalorder %v209_v17, 258  ;;  %vm218_vm2 = vcmp.lt.s32.totalorder %v210_v18, 258  ;;  %vm219_vm3 = vcmp.lt.s32.totalorder %v211_v19, 258  ;;  %v224_v27 = vsel %vm216_vm0, %v187_v12, 0.0 }
  0x65   : > { %v225_v29 = vsel %vm217_vm1, %v188_v13, 0.0  ;;  %v226_v30 = vsel %vm218_vm2, %v189_v16, 0.0  ;;  %vm220_vm4 = vcmp.lt.s32.totalorder %v212_v22, 258  ;;  %v227_v35 = vsel %vm219_vm3, %v190_v23, 0.0 }
  0x66   : > { %v233_v33 = vadd.f32 %v225_v29, %v224_v27  ;;  %v215_v37 = vadd.s32 %v207_v6, %v206_v25  ;;  %vm221_vm5 = vcmp.lt.s32.totalorder %v213_v26, 258  ;;  %v193_v39 = vand.u32 2147483647, %v185_v31 }
  0x67   : > { %v228_v40 = vsel %vm220_vm4, %v191_v28, 0.0  ;;  %vm222_vm6 = vcmp.lt.s32.totalorder %v214_v32, 258  ;;  %v194_v42 = vand.u32 2147483647, %v186_v36  ;;  %v229_v43 = vsel %vm221_vm5, %v192_v34, 0.0 }
  0x68   : > { %v234_v38 = vadd.f32 %v233_v33, %v226_v30  ;;  %vm223_vm7 = vcmp.lt.s32.totalorder %v215_v37, 258  ;;  %v230_v45 = vsel %vm222_vm6, %v193_v39, 0.0 }
  0x69   : > { %v231_v47 = vsel %vm223_vm7, %v194_v42, 0.0 }
  0x6a   : > { %v235_v41 = vadd.f32 %v234_v38, %v227_v35 }
  0x6c   : > { %v236_v44 = vadd.f32 %v235_v41, %v228_v40 }
  0x6e   : > { %v237_v46 = vadd.f32 %v236_v44, %v229_v43 }
  0x70   : > { %v238_v48 = vadd.f32 %v237_v46, %v230_v45 }
  0x72   : > { %v239_v49 = vadd.f32 %v238_v48, %v231_v47 }
  0x74   : > { %v240_v50 = vrot.slane %v239_v49, 4 }
  0x76   : > { %v241_v51 = vadd.f32 %v240_v50, %v239_v49 }
  0x78   : > { %v242_v52 = vrot.slane %v241_v51, 2 }
  0x7a   : > { %v243_v53 = vadd.f32 %v242_v52, %v241_v51 }
  0x7c   : > { %v244_v54 = vrot.slane %v243_v53, 1  ;;  %251 = sbr.rel (%p365_p8) target bundleno = 139 (0x8b), region = 36 }
  0x7e   : > { %v245_v56 = vadd.f32 %v244_v54, %v243_v53 }
  0x80   : > { %v246_v57 = vadd.f32 %v245_v56, %v232_v55 }
  0x82   : > { %247 = vst [vmem:[#allocation2] sm:$0xff] %v246_v57 }
  0x89   : > { %v252_v58 = vld [vmem:[#allocation2] sm:$0xff] }
  0x8a   : > { %253 = vst [vmem:[%s164_s17] sm:$0xff] %v252_v58 }
  0x8b PF: > { %s367_s2 = sshll.u32 %s608_s13, 7  ;;  %s268_s22 = sshll.u32 %s164_s17, 4  ;;  %s269_s22 = int_to_ptr.vmem [resolvable:$true] %s268_s22 }
  0x8c   : > { %s825_s25 = scalar_lea.hbm %s886_s1, %s367_s2  ;;  %s255_s12 = scalar_lea.sflag [#allocation5], %s162_s18 }
  0x8d   : > { %s498_s23 = scalar_lea.vmem %s269_s22, 128  ;;  %s626_s28 = smov [#allocation6]  }
  0x8e   : > { %p499_p5 = scmp.ne.s32.totalorder %s269_s22, %s498_s23  ;;  %s502_s27 = sshll.u32 %s626_s28, 4  ;;  %s503_s27 = int_to_ptr.vmem [resolvable:$false] %s502_s27 }
  0x8f   : > { %s504_s29 = scalar_lea.vmem %s503_s27, 256  ;;  %p505_p7 = scmp.lt.s32.totalorder %s269_s22, %s503_s27 }
  0x90   : > { %p500_p4 = pnand %p499_p5, %p730_p13  ;;  %p506_p9 = scmp.lt.s32.totalorder %s504_s29, %s498_s23 }
  0x92   : > { %p501_p6 = pneg %p500_p4  ;;  %p507_p11 = por %p506_p9, %p505_p7 }
  0x94   : > { %p508_p12 = pnand %p507_p11, %p501_p6 }
  0x96   : > { %511 = shalt.err (!%p508_p12)
}
  0x97   : > { %s512_s13 = scalar_lea.hbm %s825_s25, 128  ;;  %s516_s17 = scalar_lea.hbm %s886_s1, 256 }
  0x98   : > { %p513_p0 = scmp.ne.s32.totalorder %s825_s25, %s512_s13  ;;  %p517_p2 = scmp.lt.u32.totalorder %s825_s25, %s886_s1 }
  0x99   : > { %p518_p3 = scmp.lt.u32.totalorder %s516_s17, %s512_s13  ;;  %p520_p5 = scmp.lt.u32.totalorder %s512_s13, %s825_s25 }
  0x9a   : > { %p514_p10 = pnand %p513_p0, %p730_p13 }
  0x9b   : > { %p519_p8 = por %p518_p3, %p517_p2 }
  0x9c   : > { %p515_p1 = pneg %p514_p10 }
  0x9d   : > { %p521_p4 = por %p520_p5, %p519_p8 }
  0x9f   : > { %p522_p6 = pnand %p521_p4, %p515_p1 }
  0xa1   : > { %525 = shalt.err (!%p522_p6)
}
  0xa2   : > { %372 = dma.vmem_to_hbm [thread:$0]  (%p730_p13), %s269_s22, 128, %s825_s25, %s255_s12  }
  0xa3 PF: > { %p378_p7 = scmp.ge.s32.totalorder %s620_s16, 2  ;;  %s280_s2 = sand.u32 1, %s580_s6  }
  0xa4   : > { %p893_p9 = scmp.ne.s32.totalorder %s892_s5, 0  ;;  %s281_s20 = scalar_lea.sflag [#allocation5], %s280_s2 }
  0xa6   : > { %p375_p11 = pnand %p378_p7, %p893_p9 }
  0xa8   : > { %575 = dma.done.wait (!%p375_p11), %s281_s20, 128  }
  0xa9   : > { %577 = vsyncadd (!%p375_p11), %s281_s20, 4294967168  ;;  %s17_s16 = sadd.s32 1, %s620_s16   ;;  %s894_s3 = sld [smem:[#allocation9_spill]] }
  0xaa   : > { %p14_p12 = scmp.ge.s32.totalorder %s17_s16, 8   ;;  %s895_s6 = smov %s584_s7 }
  0xab   : > { %s896_s7 = smov %s588_s8  ;;  %s897_s8 = smov %s727_s30 }
  0xac   : > { %s898_s9 = smov %s596_s10  ;;  %s899_s10 = smov %s600_s11 }
  0xad   : > { %s900_s11 = smov %s741_s4  ;;  %s901_s12 = smov %s612_s14 }
  0xae   : > { %s902_s13 = smov %s616_s15  ;;  %s903_s14 = smov %s906_s19 }
  0xaf   : > { %s904_s15 = smov %s894_s3  ;;  %16 = sbr.rel (!%p14_p12) target bundleno = 9 (0x9), region = 77 }
  0xb6   :  { %286 = vsyncpa [#allocation4], 1 }
  0xb7   :  { %288 = vsyncpa [#allocation4 + $0x1], 1 }
  0xb8   :  { %289 = vsyncpa [#allocation5], 1 }
  0xb9   :  { %291 = vsyncpa [#allocation5 + $0x1], 1 }

</bundles_post_ra>
